<compile_context>
chip_gen: v6e
topology: v6e:2x2x1
jax: 0.10.0
libtpu: 0.0.40
codegen_flags: <defaults>
</compile_context>

<pallas_src>
import functools

import jax
import jax.numpy as jnp
from jax.experimental import pallas as pl
from jax.experimental.pallas import tpu as pltpu


def _sublane_pack(dtype) -> int:
    """Rows per packed sublane group: 8 for f32, 16 for bf16, 32 for int8."""
    return max(8, 32 // jnp.dtype(dtype).itemsize)


def _vmem_gather_kernel(ids_ref, table_ref, out_ref, *, pack):
    """Fast path: table resident in VMEM; gather rows with vld/vst only."""
    # ids_ref:   (N_pad,) int32 in SMEM (scalar prefetched, full array)
    # table_ref: (V, D)   table, VMEM resident (same block every grid step)
    # out_ref:   (TN, D)  pipelined VMEM output block for this grid step
    tn = out_ref.shape[0]
    base = pl.program_id(0) * tn

    def body(g, carry):
        start = pl.multiple_of(g * pack, pack)
        rows = [
            table_ref[pl.ds(ids_ref[base + start + u], 1), :]
            for u in range(pack)
        ]
        # One sublane-aligned, unmasked store per `pack` gathered rows.
        out_ref[pl.ds(start, pack), :] = jnp.concatenate(rows, axis=0)
        return carry

    jax.lax.fori_loop(0, tn // pack, body, 0)


def _hbm_gather_kernel(ids_ref, table_hbm, out_ref, copy_sem, *, unroll):
    """Large-vocab path: table stays in HBM; one row DMA per token."""
    # table_hbm: (V, D) table resident in HBM (memory_space=pl.ANY)
    tn = out_ref.shape[0]
    base = pl.program_id(0) * tn

    def body(g, carry):
        t0 = pl.multiple_of(g * unroll, unroll)
        for u in range(unroll):                      # manual unroll
            t = t0 + u
            pltpu.make_async_copy(
                table_hbm.at[ids_ref[base + t]], out_ref.at[t], copy_sem
            ).start()
        return carry

    jax.lax.fori_loop(0, tn // unroll, body, 0)

    # Single drain: the DMA semaphore counts bytes and every issued copy moves
    # exactly one (D,) row, so one (TN, D) tile-sized descriptor waits for the
    # whole tile's worth of bytes and retires all TN copies at once.
    pltpu.make_async_copy(table_hbm.at[pl.ds(0, tn)], out_ref, copy_sem).wait()


def embedder_forward(ids, table, *, token_tile=512,
                     vmem_budget_bytes=28 * 1024 * 1024):
    """Pallas equivalent of nn.Embedding(vocab_size, d_model)(ids).

    ids:   int array of shape (B, S)
    table: float array of shape (V, D)
    returns (B, S, D) array with table's dtype (exact gather).
    """
    b, s = ids.shape
    v, d = table.shape
    n = b * s
    itemsize = jnp.dtype(table.dtype).itemsize
    sub = _sublane_pack(table.dtype)

    # ---- token tile -----------------------------------------------------
    # Cap TN so the double-buffered (TN, D) out block stays small and the whole
    # kernel (resident table + out buffers) fits under the 32 MiB default
    # scoped-VMEM limit on every generation (v7x included).
    per_buf_cap = 8 * 1024 * 1024
    tn_cap = max(sub, (per_buf_cap // (d * itemsize)) // sub * sub)
    tn = min(int(token_tile), tn_cap, int(pl.next_power_of_2(max(n, 1))))
    tn = max(sub, (tn // sub) * sub)
    num_tiles = -(-n // tn)
    # Keep the grid at >= 2 steps where possible so both v7x TensorCores get
    # work (token axis is "parallel"); harmless on v5e/v6e (1 TC).
    if num_tiles == 1 and n > sub and tn >= 2 * sub:
        tn = max(sub, ((tn // 2) // sub) * sub)
        num_tiles = -(-n // tn)
    n_pad = num_tiles * tn

    # ---- ids --------------------------------------------------------------
    # Clamp so a bad id can never drive an out-of-bounds read/DMA.
    ids_flat = jnp.clip(ids.reshape(n).astype(jnp.int32), 0, v - 1)
    if n_pad != n:
        ids_flat = jnp.pad(ids_flat, (0, n_pad - n))   # pad ids gather row 0

    table_bytes = v * d * itemsize
    out_bufs_bytes = 2 * tn * d * itemsize             # double-buffered out
    use_resident_table = (table_bytes + out_bufs_bytes) <= vmem_budget_bytes

    if use_resident_table:
        kernel = functools.partial(_vmem_gather_kernel, pack=sub)
        in_specs = [pl.BlockSpec((v, d), lambda i, ids_s: (0, 0))]  # resident
        scratch_shapes = []
        bytes_accessed = table_bytes + 4 * n_pad + n_pad * d * itemsize
    else:
        kernel = functools.partial(_hbm_gather_kernel, unroll=8)
        in_specs = [pl.BlockSpec(memory_space=pl.ANY)]              # HBM table
        scratch_shapes = [pltpu.SemaphoreType.DMA(())]
        bytes_accessed = 2 * n_pad * d * itemsize + 4 * n_pad

    out_flat = pl.pallas_call(
        kernel,
        out_shape=jax.ShapeDtypeStruct((n_pad, d), table.dtype),
        grid_spec=pltpu.PrefetchScalarGridSpec(
            num_scalar_prefetch=1,                     # ids -> SMEM
            grid=(num_tiles,),
            in_specs=in_specs,
            out_specs=pl.BlockSpec((tn, d), lambda i, ids_s: (i, 0)),
            scratch_shapes=scratch_shapes,
        ),
        compiler_params=pltpu.CompilerParams(
            dimension_semantics=("parallel",),
        ),
        cost_estimate=pl.CostEstimate(
            flops=0, transcendentals=0, bytes_accessed=int(bytes_accessed)),
    )(ids_flat, table)

    if n_pad == n:
        return out_flat.reshape(b, s, d)
    # TODO(synk): for tile-unaligned N this slice adds one extra HBM copy;
    # callers that care should pad N to a multiple of the token tile upstream.
    return out_flat[:n].reshape(b, s, d)


if __name__ == "__main__":
    # Small shapes consistent with the module's forward.
    vocab_size = 64
    d_model = 128
    batch = 2
    seq = 8

    key = jax.random.PRNGKey(0)
    k_table, k_ids = jax.random.split(key)

    # Deterministic parameter init (nn.Embedding default: N(0, 1)).
    table = jax.random.normal(k_table, (vocab_size, d_model), dtype=jnp.float32)
    ids = jax.random.randint(k_ids, (batch, seq), 0, vocab_size, dtype=jnp.int32)

    out = jax.block_until_ready(embedder_forward(ids, table))
    ref = table[ids]
    assert out.shape == (batch, seq, d_model)
    assert jnp.array_equal(out, ref), "mismatch vs reference gather"

    # Second shape: tile-unaligned token count exercises the padding path.
    ids2 = jax.random.randint(jax.random.PRNGKey(1), (batch, seq - 1), 0,
                              vocab_size, dtype=jnp.int32)
    out2 = jax.block_until_ready(embedder_forward(ids2, table))
    assert jnp.array_equal(out2, table[ids2]), "mismatch on unaligned shape"

    print("KERNEL_OK")
</pallas_src>

<mosaic_0001>
module attributes {stable_mosaic.version = 11 : i64} {
  func.func @_vmem_gather_kernel(%arg0: i32, %arg1: memref<16xi32, #tpu.memory_space<smem>>, %arg2: memref<64x128xf32, #tpu.memory_space<vmem>>, %arg3: memref<8x128xf32, #tpu.memory_space<vmem>>) attributes {dimension_semantics = [#tpu.dimension_semantics<parallel>], iteration_bounds = array<i64: 2>, scalar_prefetch = 1 : i64, scratch_operands = 0 : i64, tpu.core_type = #tpu.core_type<tc>, window_params = [{pipeline_mode = #tpu.pipeline_mode<synchronous>, transform_indices = @transform_0, window_bounds = array<i64: 64, 128>}, {transform_indices = @transform_1, window_bounds = array<i64: 8, 128>}]} {
    %c8_i32 = arith.constant 8 : i32
    %0 = arith.muli %arg0, %c8_i32 : i32
    %c0_i32 = arith.constant 0 : i32
    %c8_i32_0 = arith.constant 8 : i32
    %1 = arith.muli %c0_i32, %c8_i32_0 : i32
    %2 = tpu.assume_multiple %1, 8 : i32
    %3 = arith.addi %0, %2 : i32
    %c0_i32_1 = arith.constant 0 : i32
    %4 = arith.addi %3, %c0_i32_1 : i32
    %5 = arith.index_cast %4 : i32 to index
    %6 = memref.load %arg1[%5] : memref<16xi32, #tpu.memory_space<smem>>
    %7 = arith.index_cast %6 : i32 to index
    %c0 = arith.constant 0 : index
    %8 = vector.load %arg2[%7, %c0] : memref<64x128xf32, #tpu.memory_space<vmem>>, vector<1x128xf32>
    %9 = arith.addi %0, %2 : i32
    %c1_i32 = arith.constant 1 : i32
    %10 = arith.addi %9, %c1_i32 : i32
    %11 = arith.index_cast %10 : i32 to index
    %12 = memref.load %arg1[%11] : memref<16xi32, #tpu.memory_space<smem>>
    %13 = arith.index_cast %12 : i32 to index
    %c0_2 = arith.constant 0 : index
    %14 = vector.load %arg2[%13, %c0_2] : memref<64x128xf32, #tpu.memory_space<vmem>>, vector<1x128xf32>
    %15 = arith.addi %0, %2 : i32
    %c2_i32 = arith.constant 2 : i32
    %16 = arith.addi %15, %c2_i32 : i32
    %17 = arith.index_cast %16 : i32 to index
    %18 = memref.load %arg1[%17] : memref<16xi32, #tpu.memory_space<smem>>
    %19 = arith.index_cast %18 : i32 to index
    %c0_3 = arith.constant 0 : index
    %20 = vector.load %arg2[%19, %c0_3] : memref<64x128xf32, #tpu.memory_space<vmem>>, vector<1x128xf32>
    %21 = arith.addi %0, %2 : i32
    %c3_i32 = arith.constant 3 : i32
    %22 = arith.addi %21, %c3_i32 : i32
    %23 = arith.index_cast %22 : i32 to index
    %24 = memref.load %arg1[%23] : memref<16xi32, #tpu.memory_space<smem>>
    %25 = arith.index_cast %24 : i32 to index
    %c0_4 = arith.constant 0 : index
    %26 = vector.load %arg2[%25, %c0_4] : memref<64x128xf32, #tpu.memory_space<vmem>>, vector<1x128xf32>
    %27 = arith.addi %0, %2 : i32
    %c4_i32 = arith.constant 4 : i32
    %28 = arith.addi %27, %c4_i32 : i32
    %29 = arith.index_cast %28 : i32 to index
    %30 = memref.load %arg1[%29] : memref<16xi32, #tpu.memory_space<smem>>
    %31 = arith.index_cast %30 : i32 to index
    %c0_5 = arith.constant 0 : index
    %32 = vector.load %arg2[%31, %c0_5] : memref<64x128xf32, #tpu.memory_space<vmem>>, vector<1x128xf32>
    %33 = arith.addi %0, %2 : i32
    %c5_i32 = arith.constant 5 : i32
    %34 = arith.addi %33, %c5_i32 : i32
    %35 = arith.index_cast %34 : i32 to index
    %36 = memref.load %arg1[%35] : memref<16xi32, #tpu.memory_space<smem>>
    %37 = arith.index_cast %36 : i32 to index
    %c0_6 = arith.constant 0 : index
    %38 = vector.load %arg2[%37, %c0_6] : memref<64x128xf32, #tpu.memory_space<vmem>>, vector<1x128xf32>
    %39 = arith.addi %0, %2 : i32
    %c6_i32 = arith.constant 6 : i32
    %40 = arith.addi %39, %c6_i32 : i32
    %41 = arith.index_cast %40 : i32 to index
    %42 = memref.load %arg1[%41] : memref<16xi32, #tpu.memory_space<smem>>
    %43 = arith.index_cast %42 : i32 to index
    %c0_7 = arith.constant 0 : index
    %44 = vector.load %arg2[%43, %c0_7] : memref<64x128xf32, #tpu.memory_space<vmem>>, vector<1x128xf32>
    %45 = arith.addi %0, %2 : i32
    %c7_i32 = arith.constant 7 : i32
    %46 = arith.addi %45, %c7_i32 : i32
    %47 = arith.index_cast %46 : i32 to index
    %48 = memref.load %arg1[%47] : memref<16xi32, #tpu.memory_space<smem>>
    %49 = arith.index_cast %48 : i32 to index
    %c0_8 = arith.constant 0 : index
    %50 = vector.load %arg2[%49, %c0_8] : memref<64x128xf32, #tpu.memory_space<vmem>>, vector<1x128xf32>
    %51 = tpu.concatenate %8, %14, %20, %26, %32, %38, %44, %50 in 0 : vector<1x128xf32>, vector<1x128xf32>, vector<1x128xf32>, vector<1x128xf32>, vector<1x128xf32>, vector<1x128xf32>, vector<1x128xf32>, vector<1x128xf32> -> vector<8x128xf32>
    %52 = arith.index_cast %2 : i32 to index
    %c0_9 = arith.constant 0 : index
    %53 = vector.load %arg3[%52, %c0_9] : memref<8x128xf32, #tpu.memory_space<vmem>>, vector<8x128xf32>
    tpu.vector_store %arg3[%52, %c0_9], %51 {strides = array<i32>} : memref<8x128xf32, #tpu.memory_space<vmem>>, vector<8x128xf32>,
    %c1_i32_10 = arith.constant 1 : i32
    return
  }
  func.func @transform_0(%arg0: i32, %arg1: memref<16xi32, #tpu.memory_space<smem>>) -> (i32, i32) {
    %c0_i32 = arith.constant 0 : i32
    %c0_i32_0 = arith.constant 0 : i32
    %c0_i32_1 = arith.constant 0 : i32
    return %c0_i32, %c0_i32_0 : i32, i32
  }
  func.func @transform_1(%arg0: i32, %arg1: memref<16xi32, #tpu.memory_space<smem>>) -> (i32, i32) {
    %c0_i32 = arith.constant 0 : i32
    %c0_i32_0 = arith.constant 0 : i32
    return %arg0, %c0_i32 : i32, i32
  }
}

</mosaic_0001>

<bundles_post_ra>
// kernel: tpu_custom_call.1
= control target key start
LH: loop header
LB: loop body
LE: loop exit
PB: predicated region body
PF: predicated region fallthrough
CT: control target
= control target key end

     0   :  { %s431_s9 = smov [#allocation3]   ;;  %s575_s0 = inlined_call_operand.hbm [shape: s32[16], index: 0, kind: input, shape index: {}]   ;;  %s576_s1 = inlined_call_operand.hbm [shape: f32[64,128], index: 1, kind: input, shape index: {}]   ;;  %s577_s2 = inlined_call_operand.hbm [shape: f32[16,128], index: 2, kind: output, shape index: {}]  }
   0x1   :  { %8 = dma.hbm_to_smem %s575_s0, 16, %s431_s9, [#allocation2] }
   0x2   :  { %405 = dma.done.wait [#allocation2], 16 }
   0x3   :  { %406 = vsyncadd [#allocation2], 4294967280 }
   0x4   :  { %10 = sfence }
   0x5   :  { %11 = vsyncpa [#allocation5], 0 }
   0x6   :  { %12 = vsyncpa [#allocation6], 0 }
   0x7   :  { %14 = vsyncpa [#allocation6 + $0x1], 0  ;;  %s454_s12 = smov 0   ;;  %s456_s13 = smov 0  }
   0x8   :  { %s458_s14 = smov 0   ;;  %s460_s15 = smov 0  }
   0x9 LB: > { %s475_s0 = sadd.s32 4294967295, %s429_s15   ;;  %s265_s16 = sadd.s32 4294967294, %s429_s15   ;;  %s429_s15 = sphi %s460_s15, %s585_s15   ;;  %s425_s14 = sphi %s458_s14, %s584_s14   ;;  %s421_s13 = sphi %s456_s13, %s583_s13   ;;  %s417_s12 = sphi %s454_s12, %s582_s12  }
   0xa   : > { %s479_s17 = sadd.s32 1, %s429_s15   ;;  %s48_s18 = sadd.s32 1, %s425_s14 }
   0xb   : > { %s45_s19 = ssub.s32 %s429_s15, %s479_s17  ;;  %p58_p0 = scmp.ne.s32.totalorder %s425_s14, %s421_s13 }
   0xc   : > { %p46_p1 = scmp.eq.s32.totalorder %s45_s19, 0  ;;  %p59_p2 = scmp.eq.s32.totalorder %s475_s0, 1 }
   0xd   : > { %p64_p3 = scmp.ne.s32.totalorder %s421_s13, %s417_s12  ;;  %p65_p4 = scmp.eq.s32.totalorder %s265_s16, 1 }
   0xe   : > { %s490_s20 = scalar_select %p46_p1, %s425_s14, %s48_s18  }
   0xf   : > { %p492_p5 = por %p59_p2, %p58_p0  ;;  %p496_p6 = por %p65_p4, %p64_p3 }
  0x10   : > { %p266_p7 = scmp.ge.s32.totalorder %s429_s15, 1  ;;  %p72_p8 = scmp.lt.s32.totalorder %s429_s15, 3 }
  0x11   : > { %s579_s22 = scalar_select %p496_p6, 1, 0 }
  0x12   : > { %p290_p9 = scmp.eq.s32.totalorder %s475_s0, 0  ;;  %p503_p10 = pnand %p266_p7, %p72_p8 }
  0x13   : > { %s432_s24 = smov [#allocation4]  }
  0x14   : > { %s84_s25 = sshll.u32 %s432_s24, 4  ;;  %p282_p11 = pneg %p503_p10  ;;  %s85_s25 = int_to_ptr.vmem [resolvable:$true] %s84_s25 }
  0x15   : > { %s348_s26 = scalar_lea.vmem %s85_s25, 1024  ;;  %p356_p3 = scmp.lt.s32.totalorder %s85_s25, %s85_s25 }
  0x16   : > { %p283_p12 = pnand %p290_p9, %p282_p11  ;;  %p349_p0 = scmp.ne.s32.totalorder %s85_s25, %s348_s26 }
  0x17   : > { %p357_p4 = scmp.lt.s32.totalorder %s348_s26, %s348_s26 }
  0x18   : > { %p339_p13 = pneg %p283_p12 }
  0x19   : > { %p358_p6 = por %p357_p4, %p356_p3 }
  0x1a   : > { %p351_p1 = pnand %p349_p0, %p339_p13 }
  0x1c   : > { %p352_p2 = pneg %p351_p1 }
  0x1e   : > { %p359_p7 = pnand %p358_p6, %p352_p2 }
  0x20   : > { %362 = shalt.err (!%p359_p7)
}
  0x21   : > { %s433_s27 = smov 128   ;;  %s434_s28 = smov 8  }
  0x22   : > { %285 = dma.hbm_to_vmem [thread:$0]  (!%p283_p12), %s576_s1, 1024, %s85_s25, [#allocation5], %s433_s27, %s433_s27, %s434_s28  }
  0x23   : > { %100 = sbr.rel (%p503_p10) target bundleno = 78 (0x4e), region = 24 }
  0x28   : > { %408 = dma.done.wait (%p290_p9), [#allocation5], 1024  }
  0x29   : > { %410 = vsyncadd (%p290_p9), [#allocation5], 4294966272  ;;  %s112_s3 = sand.u32 1, %s421_s13   ;;  %s271_s4 = sshll.u32 %s475_s0, 3  ;;  %vm169_vm0 = vcmask 1040384   ;;  %vm171_vm1 = vcmask 1041408  }
  0x2a   : > { %s117_s5 = sld [smem:[#allocation3 + %s271_s4]]  ;;  %s524_s6 = sshll.u32 %s112_s3, 3  ;;  %vm173_vm2 = vcmask 1042432   ;;  %vm175_vm3 = vcmask 1043456   ;;  %vm177_vm4 = vcmask 1044480   ;;  %vm179_vm5 = vcmask 1045504  }
  0x2b   : > { %s120_s7 = sadd.s32 1, %s271_s4  ;;  %s124_s9 = sadd.s32 2, %s271_s4  ;;  %vm181_vm6 = vcmask 1046528  }
  0x2c   : > { %s121_s8 = sld [smem:[#allocation3 + %s120_s7]]  ;;  %s128_s11 = sadd.s32 3, %s271_s4 }
  0x2d   : > { %s125_s10 = sld [smem:[#allocation3 + %s124_s9]]  ;;  %s132_s18 = sadd.s32 4, %s271_s4 }
  0x2e   : > { %s129_s16 = sld [smem:[#allocation3 + %s128_s11]]  ;;  %s136_s23 = sadd.s32 5, %s271_s4 }
  0x2f   : > { %s133_s19 = sld [smem:[#allocation3 + %s132_s18]]  ;;  %s140_s25 = sadd.s32 6, %s271_s4 }
  0x30   : > { %s137_s24 = sld [smem:[#allocation3 + %s136_s23]]  ;;  %s144_s26 = sadd.s32 7, %s271_s4 }
  0x31   : > { %s526_s27 = sld [smem:[#allocation3 + %s140_s25]]  ;;  %s118_s28 = scalar_lea.vmem [#allocation4], %s117_s5 }
  0x32   : > { %v119_v0 = vld [vmem:[%s118_s28] sm:$0x1]  ;;  %s122_s29 = scalar_lea.vmem [#allocation4], %s121_s8  ;;  %s528_s30 = sld [smem:[#allocation3 + %s144_s26]] }
  0x33   : > { %v123_v1 = vld [vmem:[%s122_s29] sm:$0x1]  ;;  %s126_s7 = scalar_lea.vmem [#allocation4], %s125_s10  ;;  %s114_s8 = scalar_lea.vmem [#allocation7], %s524_s6 }
  0x34   : > { %v127_v2 = vld [vmem:[%s126_s7] sm:$0x1]  ;;  %v149_v3 = vrot.slane %v123_v1, 7  ;;  %s130_s9 = scalar_lea.vmem [#allocation4], %s129_s16  ;;  %s198_s10 = sshll.u32 %s114_s8, 4  ;;  %s535_s10 = int_to_ptr.vmem [resolvable:$true] %s198_s10 }
  0x35   : > { %v131_v4 = vld [vmem:[%s130_s9] sm:$0x1]  ;;  %v152_v5 = vrot.slane %v127_v2, 6  ;;  %s134_s4 = scalar_lea.vmem [#allocation4], %s133_s19  ;;  %s273_s16 = sshll.u32 %s475_s0, 7 }
  0x36   : > { %v135_v6 = vld [vmem:[%s134_s4] sm:$0x1]  ;;  %v155_v7 = vrot.slane %v131_v4, 5  ;;  %v170_v8 = vsel %vm169_vm0, %v119_v0, %v149_v3  ;;  %s138_s5 = scalar_lea.vmem [#allocation4], %s137_s24  ;;  %s196_s6 = scalar_lea.hbm %s577_s2, %s273_s16 }
  0x37   : > { %v139_v9 = vld [vmem:[%s138_s5] sm:$0x1]  ;;  %v158_v10 = vrot.slane %v135_v6, 4  ;;  %v172_v11 = vsel %vm171_vm1, %v170_v8, %v152_v5  ;;  %s142_s11 = scalar_lea.vmem [#allocation4], %s526_s27  ;;  %s185_s0 = scalar_lea.sflag [#allocation6], %s112_s3 }
  0x38   : > { %v161_v12 = vrot.slane %v139_v9, 3  ;;  %v174_v13 = vsel %vm173_vm2, %v172_v11, %v155_v7  ;;  %v143_v14 = vld [vmem:[%s142_s11] sm:$0x1]  ;;  %s146_s18 = scalar_lea.vmem [#allocation4], %s528_s30  ;;  %s363_s24 = scalar_lea.vmem %s535_s10, 128 }
  0x39   : > { %v176_v15 = vsel %vm175_vm3, %v174_v13, %v158_v10  ;;  %v147_v16 = vld [vmem:[%s146_s18] sm:$0x1]  ;;  %v164_v17 = vrot.slane %v143_v14, 2  ;;  %p364_p6 = scmp.ne.s32.totalorder %s535_s10, %s363_s24  ;;  %s435_s25 = smov [#allocation7]  }
  0x3a   : > { %v178_v18 = vsel %vm177_vm4, %v176_v15, %v161_v12  ;;  %v167_v19 = vrot.slane %v147_v16, 1  ;;  %s367_s26 = sshll.u32 %s435_s25, 4  ;;  %s368_s26 = int_to_ptr.vmem [resolvable:$false] %s367_s26 }
  0x3b   : > { %v180_v20 = vsel %vm179_vm5, %v178_v18, %v164_v17  ;;  %p365_p8 = pnand %p364_p6, %p492_p5  ;;  %s369_s27 = scalar_lea.vmem %s368_s26, 256 }
  0x3c   : > { %v182_v21 = vsel %vm181_vm6, %v180_v20, %v167_v19  ;;  %p370_p10 = scmp.lt.s32.totalorder %s535_s10, %s368_s26  ;;  %p371_p11 = scmp.lt.s32.totalorder %s369_s27, %s363_s24 }
  0x3d   : > { %183 = vst [vmem:[%s114_s8] sm:$0xff] %v182_v21  ;;  %p366_p9 = pneg %p365_p8 }
  0x3e   : > { %p372_p12 = por %p371_p11, %p370_p10 }
  0x40   : > { %p373_p13 = pnand %p372_p12, %p366_p9 }
  0x42   : > { %376 = shalt.err (!%p373_p13)
}
  0x43   : > { %s377_s28 = scalar_lea.hbm %s196_s6, 128  ;;  %s381_s30 = scalar_lea.hbm %s577_s2, 256 }
  0x44   : > { %p378_p0 = scmp.ne.s32.totalorder %s196_s6, %s377_s28  ;;  %p382_p3 = scmp.lt.s32.totalorder %s196_s6, %s577_s2 }
  0x45   : > { %p383_p4 = scmp.lt.s32.totalorder %s381_s30, %s377_s28 }
  0x46   : > { %p379_p1 = pnand %p378_p0, %p492_p5 }
  0x47   : > { %p384_p7 = por %p383_p4, %p382_p3 }
  0x48   : > { %p380_p2 = pneg %p379_p1 }
  0x4a   : > { %p385_p6 = pnand %p384_p7, %p380_p2 }
  0x4c   : > { %388 = shalt.err (!%p385_p6)
}
  0x4d   : > { %280 = dma.vmem_to_hbm [thread:$0]  (%p492_p5), %s535_s10, 128, %s196_s6, %s185_s0  }
  0x4e PF: > { %p292_p8 = scmp.ge.s32.totalorder %s429_s15, 2  ;;  %s210_s4 = sand.u32 1, %s417_s12  }
  0x4f   : > { %p581_p9 = scmp.ne.s32.totalorder %s579_s22, 0  ;;  %s211_s5 = scalar_lea.sflag [#allocation6], %s210_s4 }
  0x51   : > { %p287_p10 = pnand %p292_p8, %p581_p9 }
  0x53   : > { %p288_p11 = pneg %p287_p10 }
  0x55   : > { %412 = dma.done.wait (%p288_p11), %s211_s5, 128  }
  0x56   : > { %414 = vsyncadd (%p288_p11), %s211_s5, 4294967168  ;;  %p17_p12 = scmp.ge.s32.totalorder %s479_s17, 4   ;;  %s582_s12 = smov %s421_s13 }
  0x57   : > { %s583_s13 = smov %s425_s14  ;;  %s584_s14 = smov %s490_s20 }
  0x58   : > { %s585_s15 = smov %s479_s17  ;;  %19 = sbr.rel (!%p17_p12) target bundleno = 9 (0x9), region = 69 }
  0x5d   :  { %216 = vsyncpa [#allocation5], 1 }
  0x5e   :  { %218 = vsyncpa [#allocation5 + $0x1], 1 }
  0x5f   :  { %219 = vsyncpa [#allocation6], 1 }
  0x60   :  { %221 = vsyncpa [#allocation6 + $0x1], 1 }

</bundles_post_ra>
